<compile_context>
chip_gen: v7x
topology: tpu7x:2x2x1
jax: 0.10.0
libtpu: 0.0.40
codegen_flags: <defaults>
</compile_context>

<pallas_src>
import functools

import jax
import jax.numpy as jnp
from jax.experimental import pallas as pl
from jax.experimental.pallas import tpu as pltpu


def critic_mlp_kernel(x_ref, w1_ref, b1_ref, w2_ref, b2_ref, o_ref, *, batch, tile):
    # x_ref:  (TB, H)   VMEM
    # w1_ref: (H, HH)   VMEM   (= fc1.weight.T)
    # b1_ref: (1, HH)   VMEM
    # w2_ref: (1, HH)   VMEM   (= fc2.weight, lane-dense)
    # b2_ref: (1, 1)    SMEM   scalar
    # o_ref:  (1, 128)  VMEM   lane-dense per-block partial sum
    x = x_ref[...]

    # fc1 + ReLU  (MXU matmul, f32 accumulation)
    h1 = jnp.dot(x, w1_ref[...], preferred_element_type=jnp.float32) + b1_ref[...]
    h1 = jnp.maximum(h1, 0.0)

    # fc2 as VPU broadcast-mul + XLU cross-lane reduce (avoids degenerate N=1 MXU matmul)
    z = jnp.sum(h1 * w2_ref[...], axis=-1, keepdims=True) + b2_ref[0, 0]   # (TB, 1)

    # softplus with PyTorch semantics (beta=1, threshold=20: linear above threshold)
    sp = jnp.where(z > 20.0, z, jnp.log1p(jnp.exp(jnp.minimum(z, 20.0))))

    # Mask rows belonging to batch padding (only possible in the last block).
    if batch % tile != 0:
        base = pl.program_id(0) * tile
        rows = base + jax.lax.broadcasted_iota(jnp.int32, (tile, 1), 0)
        sp = jnp.where(rows < batch, sp, 0.0)

    # Per-block partial sum, broadcast across the 128-lane output row.
    o_ref[...] = jnp.broadcast_to(jnp.sum(sp), (1, 128)).astype(jnp.float32)


def critic_mlp_forward(x, w1, b1, w2, b2, *, tb=1024):
    """x: (B, H); w1: (H, HH); b1: (1, HH); w2: (1, HH); b2: (1, 1). Returns scalar mean."""
    B, H = x.shape
    HH = w1.shape[1]

    def round_up(a, m):
        return (a + m - 1) // m * m

    # Batch tile: multiple of 8 sublanes, capped at tb (tune tb per chip VMEM budget).
    TB = min(tb, round_up(B, 8))
    B_pad = round_up(B, TB)
    num_blocks = B_pad // TB
    if B_pad != B:
        x = jnp.pad(x, ((0, B_pad - B), (0, 0)))

    kernel = functools.partial(critic_mlp_kernel, batch=B, tile=TB)

    out = pl.pallas_call(
        kernel,
        out_shape=jax.ShapeDtypeStruct((1, num_blocks * 128), jnp.float32),
        grid=(num_blocks,),
        in_specs=[
            pl.BlockSpec((TB, H), lambda i: (i, 0)),       # x: tiled over batch
            pl.BlockSpec((H, HH), lambda i: (0, 0)),       # w1: resident
            pl.BlockSpec((1, HH), lambda i: (0, 0)),       # b1: resident
            pl.BlockSpec((1, HH), lambda i: (0, 0)),       # w2: resident, lane-dense
            pl.BlockSpec(memory_space=pltpu.SMEM),         # b2: scalar in SMEM
        ],
        out_specs=pl.BlockSpec((1, 128), lambda i: (0, i)),
        compiler_params=pltpu.CompilerParams(
            dimension_semantics=("parallel",),
        ),
        cost_estimate=pl.CostEstimate(
            flops=2 * B_pad * H * HH + 3 * B_pad * HH,
            transcendentals=2 * B_pad,
            bytes_accessed=4 * (B_pad * H + H * HH + 2 * HH + 1 + num_blocks * 128),
        ),
    )(x, w1, b1, w2, b2.reshape(1, 1).astype(jnp.float32))

    partials = out.reshape(num_blocks, 128)[:, 0]
    return jnp.sum(partials) / B


def init_params(key, h, hh):
    # Deterministic init mimicking PyTorch nn.Linear default: U(-1/sqrt(fan_in), 1/sqrt(fan_in))
    k1, k2, k3, k4 = jax.random.split(key, 4)
    bound1 = 1.0 / jnp.sqrt(h)
    bound2 = 1.0 / jnp.sqrt(hh)
    w1 = jax.random.uniform(k1, (h, hh), jnp.float32, -bound1, bound1)   # fc1.weight.T
    b1 = jax.random.uniform(k2, (1, hh), jnp.float32, -bound1, bound1)   # fc1.bias
    w2 = jax.random.uniform(k3, (1, hh), jnp.float32, -bound2, bound2)   # fc2.weight
    b2 = jax.random.uniform(k4, (1, 1), jnp.float32, -bound2, bound2)    # fc2.bias
    return w1, b1, w2, b2


def reference_forward(x, w1, b1, w2, b2):
    h1 = jnp.maximum(x @ w1 + b1, 0.0)
    z = h1 @ w2.T + b2
    sp = jnp.where(z > 20.0, z, jnp.log1p(jnp.exp(jnp.minimum(z, 20.0))))
    return jnp.mean(sp)


if __name__ == "__main__":
    # Small shapes: B=20 with tb=8 exercises multi-block tiling + last-block masking.
    B, H, HH = 20, 32, 64
    key = jax.random.PRNGKey(0)
    kx, kp = jax.random.split(key)
    x = jax.random.normal(kx, (B, H), jnp.float32)
    w1, b1, w2, b2 = init_params(kp, H, HH)

    out = critic_mlp_forward(x, w1, b1, w2, b2, tb=8)
    out = jax.block_until_ready(out)

    ref = reference_forward(x, w1, b1, w2, b2)
    assert jnp.allclose(out, ref, rtol=1e-5, atol=1e-5), (out, ref)
    print("KERNEL_OK")
</pallas_src>

<mosaic_0001>
module attributes {stable_mosaic.version = 11 : i64} {
  func.func @critic_mlp_kernel(%arg0: i32, %arg1: memref<8x32xf32, #tpu.memory_space<vmem>>, %arg2: memref<32x64xf32, #tpu.memory_space<vmem>>, %arg3: memref<1x64xf32, #tpu.memory_space<vmem>>, %arg4: memref<1x64xf32, #tpu.memory_space<vmem>>, %arg5: memref<1x1xf32, #tpu.memory_space<smem>>, %arg6: memref<1x128xf32, #tpu.memory_space<vmem>>) attributes {dimension_semantics = [#tpu.dimension_semantics<parallel>], iteration_bounds = array<i64: 3>, scalar_prefetch = 0 : i64, scratch_operands = 0 : i64, tpu.core_type = #tpu.core_type<tc>, window_params = [{transform_indices = @transform_0, window_bounds = array<i64: 8, 32>}, {pipeline_mode = #tpu.pipeline_mode<synchronous>, transform_indices = @transform_1, window_bounds = array<i64: 32, 64>}, {pipeline_mode = #tpu.pipeline_mode<synchronous>, transform_indices = @transform_2, window_bounds = array<i64: 1, 64>}, {pipeline_mode = #tpu.pipeline_mode<synchronous>, transform_indices = @transform_3, window_bounds = array<i64: 1, 64>}, {transform_indices = @transform_4, window_bounds = array<i64: 1, 1>}, {transform_indices = @transform_5, window_bounds = array<i64: 1, 128>}]} {
    %c0 = arith.constant 0 : index
    %c0_0 = arith.constant 0 : index
    %0 = vector.load %arg1[%c0, %c0_0] : memref<8x32xf32, #tpu.memory_space<vmem>>, vector<8x32xf32>
    %c0_1 = arith.constant 0 : index
    %c0_2 = arith.constant 0 : index
    %1 = vector.load %arg2[%c0_1, %c0_2] : memref<32x64xf32, #tpu.memory_space<vmem>>, vector<32x64xf32>
    %cst = arith.constant dense<0.000000e+00> : vector<8x64xf32>
    %2 = tpu.matmul %0, %1, %cst {dimension_numbers = #tpu.dot_dimension_numbers<[1], [0], [0], [1], [0, 0, 1, 1], [], []>} : vector<8x32xf32>, vector<32x64xf32>, vector<8x64xf32> -> vector<8x64xf32>
    %c0_3 = arith.constant 0 : index
    %c0_4 = arith.constant 0 : index
    %3 = vector.load %arg3[%c0_3, %c0_4] : memref<1x64xf32, #tpu.memory_space<vmem>>, vector<1x64xf32>
    %4 = vector.broadcast %3 : vector<1x64xf32> to vector<8x64xf32>
    %5 = arith.addf %2, %4 : vector<8x64xf32>
    %cst_5 = arith.constant 0.000000e+00 : f32
    %6 = vector.broadcast %cst_5 : f32 to vector<8x64xf32>
    %7 = arith.maximumf %5, %6 : vector<8x64xf32>
    %c0_6 = arith.constant 0 : index
    %c0_7 = arith.constant 0 : index
    %8 = vector.load %arg4[%c0_6, %c0_7] : memref<1x64xf32, #tpu.memory_space<vmem>>, vector<1x64xf32>
    %9 = vector.broadcast %8 : vector<1x64xf32> to vector<8x64xf32>
    %10 = arith.mulf %7, %9 : vector<8x64xf32>
    %cst_8 = arith.constant dense<0.000000e+00> : vector<8xf32>
    %11 = vector.multi_reduction <add>, %10, %cst_8 [1] : vector<8x64xf32> to vector<8xf32>
    %12 = vector.shape_cast %11 : vector<8xf32> to vector<8x1xf32>
    %c0_9 = arith.constant 0 : index
    %c0_10 = arith.constant 0 : index
    %13 = memref.load %arg5[%c0_9, %c0_10] : memref<1x1xf32, #tpu.memory_space<smem>>
    %14 = vector.broadcast %13 : f32 to vector<8x1xf32>
    %15 = arith.addf %12, %14 : vector<8x1xf32>
    %cst_11 = arith.constant 2.000000e+01 : f32
    %16 = vector.broadcast %cst_11 : f32 to vector<8x1xf32>
    %17 = arith.cmpf ogt, %15, %16 : vector<8x1xf32>
    %cst_12 = arith.constant 2.000000e+01 : f32
    %18 = vector.broadcast %cst_12 : f32 to vector<8x1xf32>
    %19 = arith.minimumf %15, %18 : vector<8x1xf32>
    %20 = math.exp %19 : vector<8x1xf32>
    %21 = math.log1p %20 : vector<8x1xf32>
    %22 = arith.select %17, %15, %21 : vector<8x1xi1>, vector<8x1xf32>
    %c8_i32 = arith.constant 8 : i32
    %23 = arith.muli %arg0, %c8_i32 : i32
    %24 = tpu.iota {dimensions = array<i32: 0>} : vector<8x1xi32>
    %25 = vector.broadcast %23 : i32 to vector<8x1xi32>
    %26 = arith.addi %25, %24 : vector<8x1xi32>
    %c20_i32 = arith.constant 20 : i32
    %27 = vector.broadcast %c20_i32 : i32 to vector<8x1xi32>
    %28 = arith.cmpi slt, %26, %27 : vector<8x1xi32>
    %cst_13 = arith.constant 0.000000e+00 : f32
    %29 = vector.broadcast %cst_13 : f32 to vector<8x1xf32>
    %30 = arith.select %28, %22, %29 : vector<8x1xi1>, vector<8x1xf32>
    %31 = vector.shape_cast %30 : vector<8x1xf32> to vector<1x8x1xf32>
    %cst_14 = arith.constant dense<0.000000e+00> : vector<1xf32>
    %32 = vector.multi_reduction <add>, %31, %cst_14 [1, 2] : vector<1x8x1xf32> to vector<1xf32>
    %33 = vector.shape_cast %32 : vector<1xf32> to vector<1x1x1xf32>
    %34 = vector.extract %33[0, 0, 0] : f32 from vector<1x1x1xf32>
    %35 = vector.broadcast %34 : f32 to vector<1x128xf32>
    %c0_15 = arith.constant 0 : index
    %c0_16 = arith.constant 0 : index
    %36 = vector.load %arg6[%c0_15, %c0_16] : memref<1x128xf32, #tpu.memory_space<vmem>>, vector<1x128xf32>
    tpu.vector_store %arg6[%c0_15, %c0_16], %35 {strides = array<i32>} : memref<1x128xf32, #tpu.memory_space<vmem>>, vector<1x128xf32>,
    return
  }
  func.func @transform_0(%arg0: i32) -> (i32, i32) {
    %c0_i32 = arith.constant 0 : i32
    %c0_i32_0 = arith.constant 0 : i32
    return %arg0, %c0_i32 : i32, i32
  }
  func.func @transform_1(%arg0: i32) -> (i32, i32) {
    %c0_i32 = arith.constant 0 : i32
    %c0_i32_0 = arith.constant 0 : i32
    %c0_i32_1 = arith.constant 0 : i32
    return %c0_i32, %c0_i32_0 : i32, i32
  }
  func.func @transform_2(%arg0: i32) -> (i32, i32) {
    %c0_i32 = arith.constant 0 : i32
    %c0_i32_0 = arith.constant 0 : i32
    %c0_i32_1 = arith.constant 0 : i32
    return %c0_i32, %c0_i32_0 : i32, i32
  }
  func.func @transform_3(%arg0: i32) -> (i32, i32) {
    %c0_i32 = arith.constant 0 : i32
    %c0_i32_0 = arith.constant 0 : i32
    %c0_i32_1 = arith.constant 0 : i32
    return %c0_i32, %c0_i32_0 : i32, i32
  }
  func.func @transform_4(%arg0: i32) -> (i32, i32) {
    %c0_i32 = arith.constant 0 : i32
    %c0_i32_0 = arith.constant 0 : i32
    %c0_i32_1 = arith.constant 0 : i32
    return %c0_i32, %c0_i32_0 : i32, i32
  }
  func.func @transform_5(%arg0: i32) -> (i32, i32) {
    %c0_i32 = arith.constant 0 : i32
    %c0_i32_0 = arith.constant 0 : i32
    return %c0_i32, %arg0 : i32, i32
  }
}

</mosaic_0001>

<bundles_post_ra>
// kernel: tpu_custom_call.1
= control target key start
LH: loop header
LB: loop body
LE: loop exit
PB: predicated region body
PF: predicated region fallthrough
CT: control target
= control target key end

     0   :  { %s952_s0 = inlined_call_operand.hbm [shape: f32[24,32], index: 0, kind: input, shape index: {}]   ;;  %s953_s1 = inlined_call_operand.hbm [shape: f32[32,64], index: 1, kind: input, shape index: {}]   ;;  %s954_s2 = inlined_call_operand.vmem [shape: f32[1,64], index: 2, kind: input, shape index: {}]   ;;  %s955_s3 = inlined_call_operand.vmem [shape: f32[1,64], index: 3, kind: input, shape index: {}]   ;;  %s956_s4 = inlined_call_operand.<no memory space> [shape: f32[1,1], index: 4, kind: input, shape index: {}]   ;;  %s957_s5 = inlined_call_operand.hbm [shape: f32[1,384], index: 5, kind: output, shape index: {}]  }
   0x1   :  { %10 = sst [smem:[#allocation2]] %s956_s4 }
   0x2   :  { %11 = vsyncpa [#allocation4], 0 }
   0x3   :  { %13 = vsyncpa [#allocation4 + $0x1], 0 }
   0x4   :  { %14 = vsyncpa [#allocation7], 0 }
   0x5   :  { %15 = vsyncpa [#allocation5], 0 }
   0x6   :  { %17 = vsyncpa [#allocation5 + $0x1], 0  ;;  %s757_s20 = smov 0   ;;  %s759_s21 = smov 0  }
   0x7   :  { %s761_s22 = smov 0   ;;  %s763_s23 = smov 0  }
   0x8 LB: > { %s778_s4 = sadd.s32 4294967295, %s714_s23   ;;  %s480_s24 = sadd.s32 4294967294, %s714_s23   ;;  %s714_s23 = sphi %s763_s23, %s976_s23   ;;  %s710_s22 = sphi %s761_s22, %s975_s22   ;;  %s706_s21 = sphi %s759_s21, %s974_s21   ;;  %s702_s20 = sphi %s757_s20, %s973_s20  }
   0x9   : > { %p43_p0 = scmp.ne.s32.totalorder %s706_s21, %s702_s20  ;;  %p958_p1 = scmp.eq.s32.totalorder %s778_s4, 0 }
   0xa   : > { %p157_p3 = scmp.eq.s32.totalorder %s480_s24, 2  ;;  %p481_p5 = scmp.ge.s32.totalorder %s714_s23, 1 }
   0xb   : > { %p787_p4 = por %p958_p1, %p43_p0  ;;  %p164_p7 = scmp.lt.s32.totalorder %s714_s23, 4 }
   0xc   : > { %p792_p6 = por %p157_p3, %p43_p0  ;;  %s716_s28 = smov [#allocation6]  }
   0xd   : > { %s961_s25 = scalar_select %p787_p4, 1, 0 }
   0xe   : > { %s962_s26 = scalar_select %p792_p6, 1, 0 }
   0xf   : > { %p797_p8 = pnand %p481_p5, %p164_p7  ;;  %s176_s29 = sshll.u32 %s716_s28, 4  ;;  %s177_s29 = int_to_ptr.vmem [resolvable:$true] %s176_s29 }
  0x10   : > { %s810_s6 = sadd.s32 1, %s714_s23   ;;  %s30_s7 = sadd.s32 1, %s710_s22 }
  0x11   : > { %s963_s27 = scalar_select %p797_p8, 1, 0 }
  0x12   : > { %p528_p9 = pneg %p797_p8  ;;  %s27_s8 = ssub.s32 %s714_s23, %s810_s6 }
  0x13   : > { %s586_s11 = scalar_lea.hbm %s953_s1, 512 }
  0x14   : > { %p805_p10 = pnand %p528_p9, %p958_p1  ;;  %p587_p11 = scmp.ne.s32.totalorder %s953_s1, %s586_s11 }
  0x15   : > { %p593_p3 = scmp.lt.u32.totalorder %s586_s11, %s953_s1 }
  0x16   : > { %p588_p12 = pneg %p805_p10 }
  0x18   : > { %p589_p13 = pnand %p588_p12, %p587_p11 }
  0x1a   : > { %p590_p0 = pneg %p589_p13 }
  0x1c   : > { %p595_p5 = pnand %p593_p3, %p590_p0 }
  0x1e   : > { %598 = shalt.err (!%p595_p5)
}
  0x1f   : > { %s599_s16 = scalar_lea.vmem %s177_s29, 512  ;;  %p607_p2 = scmp.lt.s32.totalorder %s177_s29, %s177_s29 }
  0x20   : > { %p600_p7 = scmp.ne.s32.totalorder %s177_s29, %s599_s16  ;;  %p608_p6 = scmp.lt.s32.totalorder %s599_s16, %s599_s16 }
  0x22   : > { %p602_p9 = pnand %p600_p7, %p588_p12  ;;  %p609_p4 = por %p608_p6, %p607_p2 }
  0x24   : > { %p603_p1 = pneg %p602_p9 }
  0x26   : > { %p610_p8 = pnand %p609_p4, %p603_p1 }
  0x28   : > { %613 = shalt.err (!%p610_p8)
}
  0x29   : > { %s717_s17 = smov 128   ;;  %s718_s18 = smov 8  }
  0x2a   : > { %531 = dma.hbm_to_vmem [thread:$0]  (!%p805_p10), %s953_s1, 512, %s177_s29, [#allocation7], %s717_s17, %s717_s17, %s718_s18  }
  0x2b   : > { %p28_p11 = scmp.eq.s32.totalorder %s27_s8, 0  ;;  %p37_p2 = scmp.ne.s32.totalorder %s710_s22, %s706_s21 }
  0x2c   : > { %p38_p1 = scmp.eq.s32.totalorder %s714_s23, 0  ;;  %p541_p4 = scmp.lt.s32.totalorder %s714_s23, 3 }
  0x2d   : > { %s836_s28 = scalar_select %p28_p11, %s710_s22, %s30_s7  }
  0x2e   : > { %p39_p6 = por %p38_p1, %p37_p2  ;;  %p965_p8 = scmp.eq.s32.totalorder %s778_s4, 2 }
  0x2f   : > { %s199_s10 = sand.u32 1, %s710_s22   ;;  %s485_s11 = sshll.u32 %s714_s23, 7 }
  0x30   : > { %p840_p12 = por %p965_p8, %p37_p2  ;;  %s484_s12 = sshll.u32 %s199_s10, 3 }
  0x31   : > { %s849_s14 = scalar_lea.hbm %s952_s0, %s485_s11  ;;  %s203_s29 = scalar_lea.vmem [#allocation3], %s484_s12 }
  0x32   : > { %s210_s7 = sshll.u32 %s203_s29, 4  ;;  %p851_p10 = pnand %p541_p4, %p39_p6  ;;  %s855_s7 = int_to_ptr.vmem [resolvable:$true] %s210_s7 }
  0x33   : > { %s200_s15 = scalar_lea.sflag [#allocation4], %s199_s10  ;;  %s614_s16 = scalar_lea.hbm %s849_s14, 128 }
  0x34   : > { %p615_p13 = scmp.ne.s32.totalorder %s849_s14, %s614_s16  ;;  %p616_p0 = pneg %p851_p10 }
  0x35   : > { %s619_s19 = scalar_lea.hbm %s952_s0, 384  ;;  %p620_p7 = scmp.lt.u32.totalorder %s849_s14, %s952_s0 }
  0x36   : > { %p617_p3 = pnand %p616_p0, %p615_p13  ;;  %p621_p9 = scmp.lt.u32.totalorder %s619_s19, %s614_s16 }
  0x37   : > { %p623_p2 = scmp.lt.u32.totalorder %s614_s16, %s849_s14 }
  0x38   : > { %p618_p5 = pneg %p617_p3  ;;  %p622_p11 = por %p621_p9, %p620_p7 }
  0x3a   : > { %p624_p1 = por %p623_p2, %p622_p11 }
  0x3c   : > { %p625_p4 = pnand %p624_p1, %p618_p5 }
  0x3e   : > { %628 = shalt.err (!%p625_p4)
}
  0x3f   : > { %s629_s10 = scalar_lea.vmem %s855_s7, 128  ;;  %s719_s12 = smov [#allocation3]  }
  0x40   : > { %p630_p6 = scmp.ne.s32.totalorder %s855_s7, %s629_s10  ;;  %s634_s30 = sshll.u32 %s719_s12, 4  ;;  %s635_s30 = int_to_ptr.vmem [resolvable:$false] %s634_s30 }
  0x41   : > { %s636_s13 = scalar_lea.vmem %s635_s30, 256  ;;  %p637_p3 = scmp.lt.s32.totalorder %s855_s7, %s635_s30 }
  0x42   : > { %p632_p8 = pnand %p630_p6, %p616_p0  ;;  %p638_p7 = scmp.lt.s32.totalorder %s636_s13, %s629_s10 }
  0x44   : > { %p633_p13 = pneg %p632_p8  ;;  %p639_p9 = por %p638_p7, %p637_p3 }
  0x46   : > { %p640_p11 = pnand %p639_p9, %p633_p13 }
  0x48   : > { %643 = shalt.err (!%p640_p11)
}
  0x49   : > { %535 = dma.hbm_to_vmem [thread:$0]  (!%p851_p10), %s849_s14, 128, %s855_s7, %s200_s15  }
  0x4a   : > { %p968_p5 = scmp.ne.s32.totalorder %s963_s27, 0 }
  0x4b   : > { %s885_s29 = sand.u32 (!%p968_p5), 1, %s706_s21   ;;  %p969_p0 = scmp.ne.s32.totalorder (!%p968_p5), %s961_s25, 0 }
  0x4c   : > { %219 = sbr.rel (%p968_p5) target bundleno = 713 (0x2c9), region = 40  ;;  %s487_s16 = sshll.u32 (!%p968_p5), %s885_s29, 3 }
  0x4d   : > { %s222_s17 = scalar_lea.sflag (!%p968_p5), [#allocation4], %s885_s29  ;;  %s225_s18 = scalar_lea.vmem (!%p968_p5), [#allocation3], %s487_s16 }
  0x53   : > { %689 = dma.done.wait (%p969_p0), %s222_s17, 128  }
  0x54   : > { %691 = vsyncadd (%p969_p0), %s222_s17, 4294967168  ;;  %p970_p2 = scmp.eq.s32.totalorder %s778_s4, 0 }
  0x56   : > { %693 = dma.done.wait (%p970_p2), [#allocation7], 512   ;;  %p971_p10 = pmov %p970_p2 }
  0x57   : > { %v720_v0 = vmov 0.0|0.0   ;;  %vm721_vm0 = vmmov 0   ;;  %v722_v1 = vmov 0.0   ;;  %v256_v2 = vld [vmem:[#allocation6] sm:$0xff]  ;;  %v257_v3 = vld [vmem:[#allocation6 + $0x8] sm:$0xff]  ;;  %v258_v4 = vld [vmem:[#allocation6 + $0x10] sm:$0xff]  ;;  %v372_v24 = vlaneseq }
  0x58   : > { %695 = vsyncadd (%p971_p10), [#allocation7], 4294966784  ;;  %512 = vmatprep.subr.bf16.mxu0 %v720_v0  ;;  %509 = vmatprep.mubr.msk.f32.mxu0 %vm721_vm0, %v722_v1  ;;  %v513_v5 = vpack.c.bf16 %v257_v3, %v256_v2  ;;  %v259_v6 = vld [vmem:[#allocation6 + $0x18] sm:$0xff]  ;;  %vm267_vm1 = vcmask 261120   ;;  %v489_v9 = vld [vmem:[%s954_s2] ss:$0 sm:$0xff] }
  0x59   : > { %v516_v7 = vpack.c.bf16 %v259_v6, %v258_v4  ;;  %v255_v8 = vld [vmem:[%s225_s18] sm:$0xff]  ;;  %vm350_vm2 = vcmask 523264   ;;  %s354_s8 = sld [smem:[#allocation2]]  ;;  %s492_s15 = sshll.u32 %s778_s4, 3  ;;  %v373_v26 = vshrl.u32 %v372_v24, 7  ;;  %vm378_vm6 = vcmask 7168  }
  0x5a   : > { %514 = vmatpush3.bf16.msra.mxu0 %v513_v5  ;;  %v491_v13 = vld [vmem:[%s955_s3] ss:$0 sm:$0xff]  ;;  %v374_v27 = vstv %s492_s15  ;;  %s254_s19 = scalar_lea.vmem [#allocation8], %s885_s29  ;;  %s493_s11 = sshll.u32 %s778_s4, 4 }
  0x5b   : > { %515 = vmatprep.subr.bf16.mxu0 %v720_v0  ;;  %v375_v30 = vadd.s32 %v374_v27, %v373_v26  ;;  %s404_s24 = sshll.u32 %s254_s19, 4  ;;  %s911_s13 = scalar_lea.hbm %s957_s5, %s493_s11  ;;  %s906_s24 = int_to_ptr.vmem [resolvable:$true] %s404_s24 }
  0x5c   : > { %s392_s16 = scalar_lea.sflag [#allocation5], %s885_s29  ;;  %s644_s17 = scalar_lea.vmem %s906_s24, 16 }
  0x5d   : > { %vm376_vm4 = vcmp.lt.s32.totalorder %v375_v30, 20  ;;  %p645_p1 = scmp.ne.s32.totalorder %s906_s24, %s644_s17  ;;  %s723_s4 = smov [#allocation8]  }
  0x5e   : > { %517 = vmatpush3.bf16.msra.mxu0 %v516_v7  ;;  %s648_s18 = sshll.u32 %s723_s4, 4  ;;  %s649_s18 = int_to_ptr.vmem [resolvable:$false] %s648_s18 }
  0x5f   : > { %v355_v17 = vstv %s354_s8  ;;  %p646_p4 = pnand %p645_p1, %p840_p12  ;;  %s650_s25 = scalar_lea.vmem %s649_s18, 32 }
  0x60   : > { %p651_p8 = scmp.lt.s32.totalorder %s906_s24, %s649_s18  ;;  %p652_p13 = scmp.lt.s32.totalorder %s650_s25, %s644_s17 }
  0x61   : > { %510 = vmatmul.mubr.msk.f32.vlgmr.msra.gmra.mrb[0].mxu0 %vm267_vm1, %v255_v8  ;;  %p647_p6 = pneg %p646_p4 }
  0x62   : > { %p653_p3 = por %p652_p13, %p651_p8 }
  0x64   : > { %p654_p7 = pnand %p653_p3, %p647_p6 }
 0x134   : > { %v337_v10 = vpop.f32.mrb[0].mxu0 }
 0x135   : > { %v338_v11 = vadd.f32 %v489_v9, %v337_v10  ;;  %v511_v12 = vpop.f32.mrb[1].mxu0 }
 0x137   : > { %v341_v14 = vmax.f32 %v338_v11, 0.0 }
 0x139   : > { %v349_v15 = vmul.f32 %v491_v13, %v341_v14 }
 0x13b   : > { %v351_v16 = vsel %vm350_vm2, %v349_v15, 0.0 }
 0x13c   : > { %352 = vadd.xlane.f32.xlu0 %v351_v16 }
 0x1c9   : > { %v353_v18 = vpop.xlane.xlu0 %352 }
 0x1ca   : > { %v356_v19 = vadd.f32 %v355_v17, %v353_v18 }
 0x1cc   : > { %v358_v20 = vmin.f32 %v356_v19, 20.0  ;;  %vm357_vm5 = vcmp.gt.f32.partialorder %v356_v19, 20.0 }
 0x1ce   : > { %v359_v21 = vmul.f32 1.442695, %v358_v20 }
 0x1d0   : > { %582 = vpow2.f32 %v359_v21 }
 0x1da   : > { %v583_v22 = vpop.eup %582 }
 0x1db   : > { %v361_v23 = vadd.f32 1.0, %v583_v22  ;;  %v364_v25 = vmul.f32 -0.5, %v583_v22  ;;  %v367_v29 = vand.u32 2147483647, %v583_v22 }
 0x1dd   : > { %584 = vlog2.f32 %v361_v23  ;;  %v365_v28 = vadd.f32 1.0, %v364_v25  ;;  %vm368_vm3 = vcmp.lt.f32.partialorder %v367_v29, 0.0004427343 }
 0x1df   : > { %v366_v33 = vmul.f32 %v583_v22, %v365_v28 }
 0x1e7   : > { %v585_v31 = vpop.eup %584 }
 0x1e8   : > { %v363_v32 = vmul.f32 0.6931472, %v585_v31 }
 0x1ea   : > { %v369_v34 = vsel %vm368_vm3, %v366_v33, %v363_v32 }
 0x1eb   : > { %v370_v35 = vsel %vm357_vm5, %v356_v19, %v369_v34 }
 0x1ec   : > { %v377_v36 = vsel %vm376_vm4, %v370_v35, 0.0 }
 0x1ed   : > { %v379_v37 = vsel %vm378_vm6, %v377_v36, 0.0 }
 0x1ee   : > { %380 = vadd.xlane.f32.xlu0 %v379_v37 }
 0x27b   : > { %v381_v38 = vpop.xlane.xlu0 %380 }
 0x27c   : > { %v382_v39 = vrot.slane %v381_v38, 4 }
 0x27e   : > { %v383_v40 = vadd.f32 %v382_v39, %v381_v38 }
 0x280   : > { %v384_v41 = vrot.slane %v383_v40, 2 }
 0x282   : > { %v385_v42 = vadd.f32 %v384_v41, %v383_v40 }
 0x284   : > { %v386_v43 = vrot.slane %v385_v42, 1 }
 0x286   : > { %v387_v44 = vadd.f32 %v386_v43, %v385_v42 }
 0x288   : > { %518 = vpush %v387_v44 }
 0x2b9   : > { %s519_s10 = spop %518 }
 0x2ba   : > { %v389_v45 = vstv %s519_s10 }
 0x2bb   : > { %390 = vst [vmem:[%s254_s19] sm:$0x1] %v389_v45 }
 0x2bc   : > { %657 = shalt.err (!%p654_p7)
}
 0x2bd   : > { %s658_s29 = scalar_lea.hbm %s911_s13, 16  ;;  %s662_s7 = scalar_lea.hbm %s957_s5, 48 }
 0x2be   : > { %p659_p9 = scmp.ne.s32.totalorder %s911_s13, %s658_s29  ;;  %p663_p0 = scmp.lt.u32.totalorder %s911_s13, %s957_s5 }
 0x2bf   : > { %p664_p2 = scmp.lt.u32.totalorder %s662_s7, %s658_s29  ;;  %p666_p1 = scmp.lt.u32.totalorder %s658_s29, %s911_s13 }
 0x2c0   : > { %p660_p11 = pnand %p659_p9, %p840_p12 }
 0x2c1   : > { %p665_p10 = por %p664_p2, %p663_p0 }
 0x2c2   : > { %p661_p5 = pneg %p660_p11 }
 0x2c3   : > { %p667_p4 = por %p666_p1, %p665_p10 }
 0x2c5   : > { %p668_p6 = pnand %p667_p4, %p661_p5 }
 0x2c7   : > { %671 = shalt.err (!%p668_p6)
}
 0x2c8   : > { %526 = dma.vmem_to_hbm [thread:$0]  (%p840_p12), %s906_s24, 16, %s911_s13, %s392_s16  }
 0x2c9 PF: > { %p543_p8 = scmp.ge.s32.totalorder %s714_s23, 2  ;;  %s416_s19 = sand.u32 1, %s702_s20  }
 0x2ca   : > { %p972_p13 = scmp.ne.s32.totalorder %s962_s26, 0  ;;  %s417_s11 = scalar_lea.sflag [#allocation5], %s416_s19 }
 0x2cc   : > { %p537_p3 = pnand %p543_p8, %p972_p13 }
 0x2ce   : > { %697 = dma.done.wait (!%p537_p3), %s417_s11, 16  }
 0x2cf   : > { %699 = vsyncadd (!%p537_p3), %s417_s11, 4294967280  ;;  %p20_p7 = scmp.ge.s32.totalorder %s810_s6, 5   ;;  %s973_s20 = smov %s706_s21 }
 0x2d0   : > { %s974_s21 = smov %s710_s22  ;;  %s975_s22 = smov %s836_s28 }
 0x2d1   : > { %s976_s23 = smov %s810_s6  ;;  %22 = sbr.rel (!%p20_p7) target bundleno = 8 (0x8), region = 89 }
 0x2d8   :  { %421 = vsyncpa [#allocation4], 1 }
 0x2d9   :  { %423 = vsyncpa [#allocation4 + $0x1], 1 }
 0x2da   :  { %424 = vsyncpa [#allocation7], 1 }
 0x2db   :  { %425 = vsyncpa [#allocation5], 1 }
 0x2dc   :  { %427 = vsyncpa [#allocation5 + $0x1], 1 }

</bundles_post_ra>
